<compile_context>
chip_gen: v5e
topology: v5e:2x2
jax: 0.10.0
libtpu: 0.0.40
codegen_flags: <defaults>
</compile_context>

<pallas_src>
import functools
import math

import jax
import jax.numpy as jnp
import numpy as np
from jax import lax
from jax.experimental import pallas as pl
from jax.experimental.pallas import tpu as pltpu


# ----------------------------------------------------------------------------
# Host-side helpers (computed once, cached)
# ----------------------------------------------------------------------------
@functools.lru_cache(maxsize=None)
def _fused_selection_matrix(x_dim: int, y_dim: int):
    """Fused one-hot expansion matrix for the flat spatial index p = h * W + w.

    Row layout: rows [0, W)       -> sel_x[w, p] = 1 iff p %  W == w
                rows [W, W + H)   -> sel_y[h, p] = 1 iff p // W == h
    So  [x_emb | y_emb] (tc, W+H) @ sel (W+H, HW)  ==  x_emb[:, p%W] + y_emb[:, p//W].
    Exactly 0/1 valued -> the MXU expansion is exact.
    """
    hw = x_dim * y_dim
    p = np.arange(hw)
    sel = np.zeros((x_dim + y_dim, hw), np.float32)
    sel[p % x_dim, p] = 1.0
    sel[x_dim + p // x_dim, p] = 1.0
    return jnp.asarray(sel)


def _sublane_step(out_dtype) -> int:
    """Sublane packing step for the output dtype (8 for f32, 16 for bf16, ...)."""
    return (8 * 4) // jnp.dtype(out_dtype).itemsize


def _choose_channel_tile(embed_dim: int, hw: int, *, step: int,
                         target_out_bytes: int = 2 << 20) -> int:
    """Channel tile: a divisor of embed_dim that is a multiple of `step` (or the full
    embed_dim).  Prefer tiles that (a) keep the f32 output block under the byte
    target and (b) give >= 4 grid steps so v7x's two TensorCores both get >= 2
    pipelined steps; otherwise the largest fitting tile; otherwise the smallest."""
    cands = sorted({t for t in range(step, embed_dim + 1, step)
                    if embed_dim % t == 0} | {embed_dim})

    def fits(t):
        return t * hw * 4 <= target_out_bytes

    pref = [t for t in cands if fits(t) and embed_dim // t >= 4]
    if pref:
        return pref[-1]
    fit = [t for t in cands if fits(t)]
    if fit:
        return fit[-1]
    return cands[0]


def _vmem_limit_bytes(tc: int, hw: int, wh: int, extra_block_bytes: int = 0) -> int:
    """Explicit scoped-VMEM budget: double-buffered output block + resident sel input
    (counted x2 for safety) + matmul temp + any small per-step input blocks."""
    out_bytes = 2 * tc * hw * 4
    sel_bytes = 2 * wh * hw * 4
    temp_bytes = tc * hw * 4
    need = out_bytes + sel_bytes + temp_bytes + extra_block_bytes
    limit = int(need * 1.5) + (4 << 20)
    return int(min(max(limit, 32 << 20), 64 << 20))   # <= v7x physical VMEM per TC


# ----------------------------------------------------------------------------
# Kernels
# ----------------------------------------------------------------------------
def _sinusoid_posemb_kernel(sel_ref, o_ref, *, x_dim: int, y_dim: int,
                            embed_dim: int, n: float):
    """sel_ref: (W+H, H*W) fused one-hot matrix (constant block, DMA'd once).
    o_ref:   (tc, H*W); writes out[c, h*W + w] = x_emb[c, w] + y_emb[c, h].

    Matches the torch buffer construction:
      even c: sin(pos / n ** (c / C)),  odd c: cos(pos / n ** ((c - 1) / C)).
    """
    tc = o_ref.shape[0]
    c0 = pl.program_id(0) * tc

    # Per-channel column (tc, 1): inverse frequency + sin/cos phase (cos = sin(.+pi/2)).
    c = lax.broadcasted_iota(jnp.int32, (tc, 1), 0) + c0
    is_even = (c % 2) == 0
    c_f = c.astype(jnp.float32)
    exponent = jnp.where(is_even, c_f, c_f - 1.0) * jnp.float32(1.0 / embed_dim)
    inv_freq = jnp.exp(exponent * jnp.float32(-math.log(n)))          # n ** (-exponent)
    phase = jnp.where(is_even, jnp.float32(0.0), jnp.float32(math.pi / 2.0))

    # Fused per-channel table (tc, W+H): cols [0,W) are x positions, [W,W+H) are y.
    col = lax.broadcasted_iota(jnp.int32, (tc, x_dim + y_dim), 1).astype(jnp.float32)
    pos = jnp.where(col < jnp.float32(x_dim), col, col - jnp.float32(x_dim))
    xy_emb = jnp.sin(pos * inv_freq + phase)                          # (tc, W+H)

    # Single exact one-hot expansion on the MXU -> lane-dense (tc, H*W) slab.
    o_ref[...] = jnp.dot(xy_emb, sel_ref[...],
                         preferred_element_type=jnp.float32,
                         precision=lax.Precision.HIGHEST).astype(o_ref.dtype)


def _learnable_posemb_kernel(sel_ref, xy_tab_ref, o_ref):
    """sel_ref: (W+H, H*W), xy_tab_ref: (W+H, tc) -> o_ref: (tc, H*W).

    Tables arrive concatenated in their native (pos, C) layout (lane-dense over C).
    The transposed-LHS single dot both expands to the flat spatial axis and folds in
    the transpose — no in-kernel relayout, no full-slab add.
    """
    contract_dim0 = (((0,), (0,)), ((), ()))
    o_ref[...] = lax.dot_general(xy_tab_ref[...], sel_ref[...], contract_dim0,
                                 preferred_element_type=jnp.float32,
                                 precision=lax.Precision.HIGHEST).astype(o_ref.dtype)


# ----------------------------------------------------------------------------
# Wrappers
# ----------------------------------------------------------------------------
def pos_embedding_2d(x_dim: int, y_dim: int, embed_dim: int, n: int = 10000,
                     out_dtype=jnp.float32):
    """Non-learnable sinusoidal 2D pos embedding. Returns (1, embed_dim, y_dim, x_dim)."""
    hw = y_dim * x_dim
    wh = x_dim + y_dim
    tc = _choose_channel_tile(embed_dim, hw, step=_sublane_step(out_dtype))
    sel = _fused_selection_matrix(x_dim, y_dim)
    kernel = functools.partial(_sinusoid_posemb_kernel, x_dim=x_dim, y_dim=y_dim,
                               embed_dim=embed_dim, n=float(n))
    flat = pl.pallas_call(
        kernel,
        out_shape=jax.ShapeDtypeStruct((embed_dim, hw), out_dtype),
        grid=(embed_dim // tc,),
        in_specs=[pl.BlockSpec((wh, hw), lambda i: (0, 0))],    # constant -> DMA'd once
        out_specs=pl.BlockSpec((tc, hw), lambda i: (i, 0)),
        compiler_params=pltpu.CompilerParams(
            dimension_semantics=("parallel",),
            vmem_limit_bytes=_vmem_limit_bytes(tc, hw, wh)),
    )(sel)
    return flat.reshape(1, embed_dim, y_dim, x_dim)   # free: same row-major bytes


def pos_embedding_2d_learnable(x_emb_table, y_emb_table, out_dtype=jnp.float32):
    """Learnable path. x_emb_table: (x_dim, C), y_emb_table: (y_dim, C) in their
    native nn.Embedding layout. Returns (1, C, y_dim, x_dim)."""
    x_dim, embed_dim = x_emb_table.shape
    y_dim, _ = y_emb_table.shape
    hw = y_dim * x_dim
    wh = x_dim + y_dim
    # The table block puts the channel tile on the lane axis -> 128-aligned or full C.
    tc = _choose_channel_tile(embed_dim, hw, step=128)
    sel = _fused_selection_matrix(x_dim, y_dim)
    xy_tab = jnp.concatenate([x_emb_table, y_emb_table], axis=0).astype(jnp.float32)
    flat = pl.pallas_call(
        _learnable_posemb_kernel,
        out_shape=jax.ShapeDtypeStruct((embed_dim, hw), out_dtype),
        grid=(embed_dim // tc,),
        in_specs=[
            pl.BlockSpec((wh, hw), lambda i: (0, 0)),           # sel: constant block
            pl.BlockSpec((wh, tc), lambda i: (0, i)),           # fused (pos, C) tables
        ],
        out_specs=pl.BlockSpec((tc, hw), lambda i: (i, 0)),
        compiler_params=pltpu.CompilerParams(
            dimension_semantics=("parallel",),
            vmem_limit_bytes=_vmem_limit_bytes(tc, hw, wh,
                                               extra_block_bytes=2 * wh * tc * 4)),
    )(sel, xy_tab)
    return flat.reshape(1, embed_dim, y_dim, x_dim)


class PosEmbedding2D:
    """JAX/Pallas counterpart of the PyTorch module.

    Non-learnable: the embedding is a compile-time constant for fixed
    (x_dim, y_dim, embed_dim, n), so it is computed ONCE here and the cached array is
    returned by __call__ (no per-step kernel launch / HBM write).
    Learnable: N(0,1) tables (nn.Embedding default init); the expansion kernel runs
    per call since the tables may change during training.
    """

    def __init__(self, x_dim, y_dim, embed_dim, learnable=False, _n=10000, key=None):
        self.x_dim, self.y_dim, self.embed_dim = x_dim, y_dim, embed_dim
        self.learnable, self._n = learnable, _n
        if learnable:
            key = jax.random.PRNGKey(0) if key is None else key
            kx, ky = jax.random.split(key)
            self.x_pos_emb = jax.random.normal(kx, (x_dim, embed_dim), jnp.float32)
            self.y_pos_emb = jax.random.normal(ky, (y_dim, embed_dim), jnp.float32)
            self._cached = None
        else:
            self._cached = pos_embedding_2d(x_dim, y_dim, embed_dim, n=_n)

    def __call__(self):
        if self.learnable:
            return pos_embedding_2d_learnable(self.x_pos_emb, self.y_pos_emb)
        return self._cached


# ----------------------------------------------------------------------------
# Pure-JAX reference (mirrors the torch buffer construction + forward)
# ----------------------------------------------------------------------------
def _ref_table(dim: int, embed_dim: int, n: int):
    pos = jnp.arange(dim, dtype=jnp.float32)[:, None]
    d = jnp.arange(embed_dim, dtype=jnp.float32)[None, :]
    even = (jnp.arange(embed_dim) % 2 == 0)[None, :]
    exponent = jnp.where(even, d, d - 1.0) / jnp.float32(embed_dim)
    arg = pos / (jnp.float32(n) ** exponent)
    return jnp.where(even, jnp.sin(arg), jnp.cos(arg))                 # (dim, C)


def ref_pos_embedding_2d(x_dim: int, y_dim: int, embed_dim: int, n: int = 10000):
    x_tab = _ref_table(x_dim, embed_dim, n)  # (W, C)
    y_tab = _ref_table(y_dim, embed_dim, n)  # (H, C)
    return (x_tab.T[:, None, :] + y_tab.T[:, :, None])[None]          # (1, C, H, W)


# ----------------------------------------------------------------------------
if __name__ == "__main__":
    x_dim, y_dim, embed_dim = 16, 16, 32

    # Non-learnable (default) sinusoidal path: all compute in-kernel.
    out = jax.block_until_ready(pos_embedding_2d(x_dim, y_dim, embed_dim))
    ref = ref_pos_embedding_2d(x_dim, y_dim, embed_dim)
    assert out.shape == (1, embed_dim, y_dim, x_dim)
    np.testing.assert_allclose(np.asarray(out), np.asarray(ref), rtol=1e-5, atol=3e-5)

    # Cached-module path returns the same constant without relaunching the kernel.
    mod = PosEmbedding2D(x_dim, y_dim, embed_dim)
    np.testing.assert_allclose(np.asarray(mod()), np.asarray(ref), rtol=1e-5, atol=3e-5)

    # Learnable path: deterministic N(0,1) tables (nn.Embedding default init).
    key = jax.random.PRNGKey(0)
    kx, ky = jax.random.split(key)
    x_table = jax.random.normal(kx, (x_dim, embed_dim), dtype=jnp.float32)
    y_table = jax.random.normal(ky, (y_dim, embed_dim), dtype=jnp.float32)
    out_l = jax.block_until_ready(pos_embedding_2d_learnable(x_table, y_table))
    ref_l = (x_table.T[:, None, :] + y_table.T[:, :, None])[None]
    assert out_l.shape == (1, embed_dim, y_dim, x_dim)
    np.testing.assert_allclose(np.asarray(out_l), np.asarray(ref_l), rtol=1e-5, atol=3e-5)

    print("KERNEL_OK")
</pallas_src>

<mosaic_0001>
module attributes {stable_mosaic.version = 11 : i64} {
  func.func @_sinusoid_posemb_kernel(%arg0: i32, %arg1: memref<32x256xf32, #tpu.memory_space<vmem>>, %arg2: memref<8x256xf32, #tpu.memory_space<vmem>>) attributes {dimension_semantics = [#tpu.dimension_semantics<parallel>], iteration_bounds = array<i64: 4>, scalar_prefetch = 0 : i64, scratch_operands = 0 : i64, tpu.core_type = #tpu.core_type<tc>, window_params = [{pipeline_mode = #tpu.pipeline_mode<synchronous>, transform_indices = @transform_0, window_bounds = array<i64: 32, 256>}, {transform_indices = @transform_1, window_bounds = array<i64: 8, 256>}]} {
    %c8_i32 = arith.constant 8 : i32
    %0 = arith.muli %arg0, %c8_i32 : i32
    %1 = tpu.iota {dimensions = array<i32: 0>} : vector<8x1xi32>
    %2 = vector.broadcast %0 : i32 to vector<8x1xi32>
    %3 = arith.addi %1, %2 : vector<8x1xi32>
    %c2_i32 = arith.constant 2 : i32
    %c0_i32 = arith.constant 0 : i32
    %4 = arith.cmpi eq, %c2_i32, %c0_i32 : i32
    %c1_i32 = arith.constant 1 : i32
    %5 = arith.select %4, %c1_i32, %c2_i32 : i32
    %6 = vector.broadcast %5 : i32 to vector<8x1xi32>
    %7 = arith.remsi %3, %6 : vector<8x1xi32>
    %c0_i32_0 = arith.constant 0 : i32
    %8 = vector.broadcast %c0_i32_0 : i32 to vector<8x1xi32>
    %9 = arith.cmpi ne, %7, %8 : vector<8x1xi32>
    %c0_i32_1 = arith.constant 0 : i32
    %10 = vector.broadcast %c0_i32_1 : i32 to vector<8x1xi32>
    %11 = arith.cmpi slt, %7, %10 : vector<8x1xi32>
    %c0_i32_2 = arith.constant 0 : i32
    %12 = arith.cmpi slt, %5, %c0_i32_2 : i32
    %13 = vector.broadcast %12 : i1 to vector<8x1xi1>
    %14 = vector.broadcast %13 : vector<8x1xi1> to vector<8x1xi1>
    %15 = arith.xori %11, %14 : vector<8x1xi1>
    %16 = arith.andi %15, %9 : vector<8x1xi1>
    %17 = vector.broadcast %5 : i32 to vector<8x1xi32>
    %18 = arith.addi %7, %17 : vector<8x1xi32>
    %19 = arith.select %16, %18, %7 : vector<8x1xi1>, vector<8x1xi32>
    %c0_i32_3 = arith.constant 0 : i32
    %20 = vector.broadcast %c0_i32_3 : i32 to vector<8x1xi32>
    %21 = arith.cmpi eq, %19, %20 : vector<8x1xi32>
    %22 = arith.sitofp %3 : vector<8x1xi32> to vector<8x1xf32>
    %cst = arith.constant 1.000000e+00 : f32
    %23 = vector.broadcast %cst : f32 to vector<8x1xf32>
    %24 = arith.subf %22, %23 : vector<8x1xf32>
    %25 = arith.select %21, %22, %24 : vector<8x1xi1>, vector<8x1xf32>
    %cst_4 = arith.constant 3.125000e-02 : f32
    %26 = vector.broadcast %cst_4 : f32 to vector<8x1xf32>
    %27 = arith.mulf %25, %26 : vector<8x1xf32>
    %cst_5 = arith.constant -9.21034049 : f32
    %28 = vector.broadcast %cst_5 : f32 to vector<8x1xf32>
    %29 = arith.mulf %27, %28 : vector<8x1xf32>
    %30 = math.exp %29 : vector<8x1xf32>
    %cst_6 = arith.constant 0.000000e+00 : f32
    %cst_7 = arith.constant 1.57079637 : f32
    %31 = vector.broadcast %cst_6 : f32 to vector<8x1xf32>
    %32 = vector.broadcast %cst_7 : f32 to vector<8x1xf32>
    %33 = arith.select %21, %31, %32 : vector<8x1xi1>, vector<8x1xf32>
    %34 = tpu.iota {dimensions = array<i32: 1>} : vector<8x32xi32>
    %35 = arith.sitofp %34 : vector<8x32xi32> to vector<8x32xf32>
    %cst_8 = arith.constant 1.600000e+01 : f32
    %36 = vector.broadcast %cst_8 : f32 to vector<8x32xf32>
    %37 = arith.cmpf olt, %35, %36 : vector<8x32xf32>
    %cst_9 = arith.constant 1.600000e+01 : f32
    %38 = vector.broadcast %cst_9 : f32 to vector<8x32xf32>
    %39 = arith.subf %35, %38 : vector<8x32xf32>
    %40 = arith.select %37, %35, %39 : vector<8x32xi1>, vector<8x32xf32>
    %41 = vector.broadcast %30 : vector<8x1xf32> to vector<8x32xf32>
    %42 = arith.mulf %40, %41 : vector<8x32xf32>
    %43 = vector.broadcast %33 : vector<8x1xf32> to vector<8x32xf32>
    %44 = arith.addf %42, %43 : vector<8x32xf32>
    %45 = math.sin %44 : vector<8x32xf32>
    %c0 = arith.constant 0 : index
    %c0_10 = arith.constant 0 : index
    %46 = vector.load %arg1[%c0, %c0_10] : memref<32x256xf32, #tpu.memory_space<vmem>>, vector<32x256xf32>
    %cst_11 = arith.constant dense<0.000000e+00> : vector<8x256xf32>
    %47 = tpu.matmul %45, %46, %cst_11 {dimension_numbers = #tpu.dot_dimension_numbers<[1], [0], [0], [1], [0, 0, 1, 1], [], []>, precision = #tpu.contract_precision<fp32>} : vector<8x32xf32>, vector<32x256xf32>, vector<8x256xf32> -> vector<8x256xf32>
    %c0_12 = arith.constant 0 : index
    %c0_13 = arith.constant 0 : index
    %48 = vector.load %arg2[%c0_12, %c0_13] : memref<8x256xf32, #tpu.memory_space<vmem>>, vector<8x256xf32>
    tpu.vector_store %arg2[%c0_12, %c0_13], %47 {strides = array<i32>} : memref<8x256xf32, #tpu.memory_space<vmem>>, vector<8x256xf32>,
    return
  }
  func.func @transform_0(%arg0: i32) -> (i32, i32) {
    %c0_i32 = arith.constant 0 : i32
    %c0_i32_0 = arith.constant 0 : i32
    %c0_i32_1 = arith.constant 0 : i32
    return %c0_i32, %c0_i32_0 : i32, i32
  }
  func.func @transform_1(%arg0: i32) -> (i32, i32) {
    %c0_i32 = arith.constant 0 : i32
    %c0_i32_0 = arith.constant 0 : i32
    return %arg0, %c0_i32 : i32, i32
  }
}

</mosaic_0001>

<bundles_post_ra>
// kernel: tpu_custom_call.1
= control target key start
LH: loop header
LB: loop body
LE: loop exit
PB: predicated region body
PF: predicated region fallthrough
CT: control target
= control target key end

     0   :  { %6 = vsyncpa [#allocation3], 0  ;;  %s1205_s0 = inlined_call_operand.hbm [shape: f32[32,256], index: 0, kind: input, shape index: {}]   ;;  %s1206_s1 = inlined_call_operand.hbm [shape: f32[32,256], index: 1, kind: output, shape index: {}]  }
   0x1   :  { %7 = vsyncpa [#allocation4], 0 }
   0x2   :  { %9 = vsyncpa [#allocation4 + $0x1], 0  ;;  %s960_s6 = smov 0   ;;  %s962_s7 = smov 0  }
   0x3   :  { %s964_s8 = smov 0   ;;  %s966_s9 = smov 0  }
   0x4 LB: > { %s981_s10 = sadd.s32 4294967295, %s937_s9   ;;  %s761_s11 = sadd.s32 4294967294, %s937_s9   ;;  %s937_s9 = sphi %s966_s9, %s1216_s9   ;;  %s933_s8 = sphi %s964_s8, %s1215_s8   ;;  %s929_s7 = sphi %s962_s7, %s1214_s7   ;;  %s925_s6 = sphi %s960_s6, %s1213_s6  }
   0x5   : > { %s985_s12 = sadd.s32 1, %s937_s9   ;;  %s43_s13 = sadd.s32 1, %s933_s8 }
   0x6   : > { %s40_s14 = ssub.s32 %s937_s9, %s985_s12  ;;  %p53_p0 = scmp.ne.s32.totalorder %s933_s8, %s929_s7 }
   0x7   : > { %p41_p1 = scmp.eq.s32.totalorder %s40_s14, 0  ;;  %p54_p2 = scmp.eq.s32.totalorder %s981_s10, 3 }
   0x8   : > { %p59_p3 = scmp.ne.s32.totalorder %s929_s7, %s925_s6  ;;  %p60_p4 = scmp.eq.s32.totalorder %s761_s11, 3 }
   0x9   : > { %s996_s15 = scalar_select %p41_p1, %s933_s8, %s43_s13  }
   0xa   : > { %p998_p5 = por %p54_p2, %p53_p0  ;;  %p1002_p6 = por %p60_p4, %p59_p3 }
   0xb   : > { %p762_p7 = scmp.ge.s32.totalorder %s937_s9, 1  ;;  %p67_p8 = scmp.lt.s32.totalorder %s937_s9, 5 }
   0xc   : > { %p793_p9 = scmp.eq.s32.totalorder %s981_s10, 0  ;;  %s78_s20 = sshll.u32 %s1205_s0, 4  ;;  %s79_s20 = int_to_ptr.hbm [resolvable:$true] %s78_s20 }
   0xd   : > { %p68_p10 = pnand %p762_p7, %p67_p8  ;;  %s939_s21 = smov [#allocation2]  }
   0xe   : > { %s80_s22 = sshll.u32 %s939_s21, 4  ;;  %s940_s23 = smov 256   ;;  %s81_s22 = int_to_ptr.vmem [resolvable:$true] %s80_s22 }
   0xf   : > { %p785_p11 = pneg %p68_p10  ;;  %s941_s24 = smov 16  }
  0x10   : > { %96 = sbr.rel (%p68_p10) target bundleno = 318 (0x13e), region = 24 }
  0x11   : > { %p786_p12 = pnand %p793_p9, %p785_p11 }
  0x13   : > { %788 = dma.hbm_to_vmem [thread:$0]  (!%p786_p12), %s79_s20, 1024, %s81_s22, [#allocation3], %s940_s23, %s940_s23, %s941_s24  }
  0x15   : > { %916 = dma.done.wait (%p793_p9), [#allocation3], 1024  }
  0x16   : > { %918 = vsyncadd (%p793_p9), [#allocation3], 4294966272  ;;  %s767_s25 = sshll.u32 %s981_s10, 3  ;;  %v113_v0 = vlaneseq  ;;  %v307_v5 = vld [vmem:[#allocation2 + $0x30] sm:$0xff]  ;;  %v305_v6 = vld [vmem:[#allocation2 + $0x20] sm:$0xff]  ;;  %s109_s26 = sand.u32 1, %s929_s7  }
  0x17   : > { %v115_v1 = vstv %s767_s25  ;;  %v303_v7 = vld [vmem:[#allocation2 + $0x10] sm:$0xff]  ;;  %v1019_v8 = vand.u32 4294901760, %v307_v5  ;;  %v1021_v9 = vand.u32 4294901760, %v305_v6  ;;  %v301_v12 = vld [vmem:[#allocation2] sm:$0xff]  ;;  %v942_v41 = vmov 1.5707964  }
  0x18   : > { %v114_v2 = vshrl.u32 %v113_v0, 7  ;;  %v1024_v11 = vand.u32 4294901760, %v303_v7  ;;  %v1031_v20 = vand.u32 4294901760, %v301_v12  ;;  %v139_v32 = vand.u32 127, %v113_v0  ;;  %s766_s27 = sshll.u32 %s109_s26, 4  ;;  %s778_s29 = sshll.u32 %s981_s10, 4 }
  0x19   : > { %v355_v14 = vsub.f32 %v307_v5, %v1019_v8  ;;  %v361_v15 = vsub.f32 %v305_v6, %v1021_v9  ;;  %426 = vmatpush.msra.mxu3 %v1019_v8  ;;  %326 = vmatpush.msra.mxu0 %v1019_v8  ;;  %v943_v56 = vmov 683565275   ;;  %v944_v58 = vmov 2475754826   ;;  %s111_s28 = scalar_lea.vmem [#allocation5], %s766_s27  ;;  %s697_s3 = scalar_lea.hbm %s1206_s1, %s778_s29 }
  0x1a   : > { %v116_v3 = vadd.s32 %v115_v1, %v114_v2  ;;  %v1034_v21 = vsub.f32 %v303_v7, %v1024_v11  ;;  %v1042_v29 = vsub.f32 %v301_v12, %v1031_v20  ;;  %v140_v36 = vcvt.s32.f32 %v139_v32  ;;  %s699_s4 = sshll.u32 %s111_s28, 4  ;;  %s701_s5 = sshll.u32 %s697_s3, 4  ;;  %s700_s4 = int_to_ptr.vmem [resolvable:$true] %s699_s4  ;;  %s702_s5 = int_to_ptr.hbm [resolvable:$true] %s701_s5 }
  0x1b   : > { %397 = vmatpush.msra.mxu2 %v355_v14  ;;  %v356_v18 = vand.u32 4294901760, %v355_v14  ;;  %428 = vmatpush.msra.mxu3 %v1021_v9  ;;  %v362_v19 = vand.u32 4294901760, %v361_v15  ;;  %v945_v60 = vmov 2131351028   ;;  %v946_v62 = vmov 2102212464  }
  0x1c   : > { %vm117_vm0 = vcmp.lt.s32.totalorder %v116_v3, 0  ;;  %v118_v4 = vsub.s32 0, %v116_v3  ;;  %v130_v17 = vcvt.s32.f32 %v116_v3  ;;  %328 = vmatpush.msra.mxu0 %v1021_v9  ;;  %v769_v38 = vadd.f32 -16.0, %v140_v36  ;;  %s686_s10 = scalar_lea.sflag [#allocation4], %s109_s26  ;;  %s885_s11 = sshra.s32 %s702_s5, 4  ;;  %s886_s11 = int_to_ptr.hbm [resolvable:$true] %s885_s11 }
  0x1d   : > { %400 = vmatpush.msra.mxu2 %v361_v15  ;;  %v357_v23 = vsub.f32 %v355_v14, %v356_v18  ;;  %v363_v24 = vsub.f32 %v361_v15, %v362_v19  ;;  %430 = vmatpush.msra.mxu3 %v1024_v11  ;;  %vm141_vm5 = vcmp.lt.f32.partialorder %v140_v36, 16.0  ;;  %v947_v0 = vmov 920167782   ;;  %s887_s13 = scalar_lea.hbm %s886_s11, 16  ;;  %s891_s19 = scalar_lea.hbm %s1206_s1, 64 }
  0x1e   : > { %v119_v10 = vsel %vm117_vm0, %v118_v4, %v116_v3  ;;  %v768_v26 = vadd.f32 -1.0, %v130_v17  ;;  %330 = vmatpush.msra.mxu0 %v1024_v11  ;;  %v143_v39 = vsel %vm141_vm5, %v140_v36, %v769_v38  ;;  %v948_v6 = vmov 1326507024   ;;  %p888_p13 = scmp.ne.s32.totalorder %s886_s11, %s887_s13  ;;  %p892_p2 = scmp.lt.s32.totalorder %s886_s11, %s1206_s1 }
  0x1f   : > { %v121_v13 = vand.u32 1, %v119_v10  ;;  %v358_v27 = vand.u32 4294901760, %v357_v23  ;;  %403 = vmatpush.msra.mxu2 %v1034_v21  ;;  %v364_v28 = vand.u32 4294901760, %v363_v24  ;;  %432 = vmatpush.msra.mxu3 %v1031_v20  ;;  %p893_p3 = scmp.lt.s32.totalorder %s891_s19, %s887_s13 }
  0x20   : > { %332 = vmatpush.msra.mxu0 %v1031_v20  ;;  %p889_p0 = pnand %p888_p13, %p998_p5 }
  0x21   : > { %v122_v16 = vsub.s32 0, %v121_v13  ;;  %359 = vmatpush.msra.mxu1 %v358_v27  ;;  %406 = vmatpush.msra.mxu2 %v1042_v29  ;;  %p894_p4 = por %p893_p3, %p892_p2 }
  0x22   : > { %455 = vmatpush.msrb.mxu0 %v356_v18  ;;  %p890_p1 = pneg %p889_p0 }
  0x23   : > { %v123_v22 = vsel %vm117_vm0, %v122_v16, %v121_v13  ;;  %365 = vmatpush.msra.mxu1 %v364_v28 }
  0x24   : > { %vm124_vm1 = vcmp.ne.s32.totalorder %v123_v22, 0  ;;  %vm125_vm2 = vcmp.lt.s32.totalorder %v123_v22, 0  ;;  %v127_v25 = vadd.s32 2, %v123_v22  ;;  %459 = vmatpush.msrb.mxu0 %v362_v19  ;;  %p895_p7 = pnand %p894_p4, %p890_p1 }
  0x25   : > { %vm126_vm3 = vmand %vm125_vm2, %vm124_vm1 }
  0x26   : > { %v128_v30 = vsel %vm126_vm3, %v127_v25, %v123_v22 }
  0x27   : > { %vm1047_vm4 = vcmp.eq.s32.totalorder %v128_v30, 0 }
  0x28   : > { %v132_v33 = vsel %vm1047_vm4, %v130_v17, %v768_v26  ;;  %v137_v42 = vsel %vm1047_vm4, 0.0, %v942_v41 }
  0x29   : > { %v133_v34 = vmul.f32 0.03125, %v132_v33 }
  0x2b   : > { %v134_v35 = vmul.f32 -9.2103405, %v133_v34 }
  0x2d   : > { %v135_v37 = vmul.f32 1.442695, %v134_v35 }
  0x2f   : > { %839 = vpow2.f32 %v135_v37 }
  0x35   : > { %v840_v40 = vpop.eup %839 }
  0x36   : > { %v144_v43 = vmul.f32 %v840_v40, %v143_v39 }
  0x38   : > { %v1055_v44 = vadd.f32 %v144_v43, %v137_v42 }
  0x3a   : > { %v149_v45 = vand.u32 2139095040, %v1055_v44  ;;  %v146_v47 = vand.u32 2147483647, %v1055_v44  ;;  %vm148_vm2 = vcmp.lt.s32.totalorder %v1055_v44, 0 }
  0x3c   : > { %v150_v46 = vshrl.u32 %v149_v45, 23  ;;  %v153_v50 = vand.u32 8388607, %v146_v47  ;;  %vm1122_vm3 = vcmp.le.f32.partialorder %v146_v47, 0.7853982 }
  0x3e   : > { %v770_v48 = vadd.s32 4294967169, %v150_v46  ;;  %v154_v53 = vor.u32 8388608, %v153_v50 }
  0x40   : > { %v156_v49 = vadd.s32 1, %v770_v48  ;;  %v1064_v10 = vshll.u32 %v154_v53, 8 }
  0x42   : > { %vm157_vm6 = vcmp.gt.s32.totalorder %v156_v49, 0  ;;  %v195_v25 = vand.u32 65535, %v1064_v10  ;;  %v196_v26 = vshrl.u32 %v1064_v10, 16 }
  0x43   : > { %v158_v51 = vsel %vm157_vm6, %v156_v49, 0 }
  0x44   : > { %v160_v52 = vand.u32 31, %v158_v51  ;;  %v1061_v54 = vshrl.u32 %v158_v51, 5 }
  0x46   : > { %v161_v55 = vsub.s32 32, %v160_v52  ;;  %v163_v57 = vshll.u32 %v943_v56, %v160_v52  ;;  %v166_v59 = vshll.u32 %v944_v58, %v160_v52  ;;  %v169_v61 = vshll.u32 %v945_v60, %v160_v52 }
  0x47   : > { %v172_v63 = vshll.u32 %v946_v62, %v160_v52  ;;  %v175_v1 = vshll.u32 %v947_v0, %v160_v52  ;;  %vm178_vm7 = vcmp.lt.s32.totalorder %v1061_v54, 1  ;;  %vm181_vm8 = vcmp.lt.s32.totalorder %v1061_v54, 4 }
  0x48   : > { %v164_v2 = vshrl.u32 %v944_v58, %v161_v55  ;;  %v167_v3 = vshrl.u32 %v945_v60, %v161_v55  ;;  %v170_v4 = vshrl.u32 %v946_v62, %v161_v55  ;;  %v173_v5 = vshrl.u32 %v947_v0, %v161_v55 }
  0x49   : > { %v176_v7 = vshrl.u32 %v948_v6, %v161_v55  ;;  %vm180_vm9 = vcmp.lt.s32.totalorder %v1061_v54, 3  ;;  %vm179_vm10 = vcmp.lt.s32.totalorder %v1061_v54, 2  ;;  %v162_v34 = vshrl.u32 %v943_v56, %v161_v55 }
  0x4a   : > { %v165_v12 = vor.u32 %v164_v2, %v163_v57  ;;  %v168_v13 = vor.u32 %v167_v3, %v166_v59  ;;  %v171_v14 = vor.u32 %v170_v4, %v169_v61  ;;  %v174_v15 = vor.u32 %v173_v5, %v172_v63 }
  0x4b   : > { %v177_v16 = vor.u32 %v176_v7, %v175_v1  ;;  %v949_v52 = vmov 0  }
  0x4c   : > { %v186_v17 = vsel %vm178_vm7, %v165_v12, %v168_v13  ;;  %v190_v18 = vsel %vm178_vm7, %v168_v13, %v171_v14  ;;  %v187_v19 = vsel %vm181_vm8, %v174_v15, 920167782  ;;  %v182_v49 = vsel %vm178_vm7, %v162_v34, %v165_v12 }
  0x4d   : > { %v191_v22 = vsel %vm181_vm8, %v177_v16, 1326507024  ;;  %v188_v23 = vsel %vm180_vm9, %v171_v14, %v187_v19  ;;  %v183_v51 = vsel %vm181_vm8, %v171_v14, 2102212464  ;;  %vm289_vm7 = vweird.f32 %v1055_v44 }
  0x4e   : > { %v192_v24 = vsel %vm180_vm9, %v174_v15, %v191_v22  ;;  %v189_v27 = vsel %vm179_vm10, %v186_v17, %v188_v23  ;;  %v184_v62 = vsel %vm180_vm9, %v168_v13, %v183_v51  ;;  %vm309_vm8 = vcmask 261120  }
  0x4f   : > { %v193_v28 = vsel %vm179_vm10, %v190_v18, %v192_v24  ;;  %v219_v32 = vand.u32 65535, %v189_v27  ;;  %v220_v33 = vshrl.u32 %v189_v27, 16  ;;  %v185_v6 = vsel %vm179_vm10, %v182_v49, %v184_v62 }
  0x50   : > { %v197_v30 = vand.u32 65535, %v193_v28  ;;  %v198_v31 = vshrl.u32 %v193_v28, 16  ;;  %v239_v15 = vmul.u32 %v1064_v10, %v185_v6  ;;  %v374_v49 = vand.u32 4294901760, %v1042_v29 }
  0x51   : > { %v221_v38 = vmul.u32 %v219_v32, %v195_v25  ;;  %v222_v39 = vmul.u32 %v220_v33, %v195_v25  ;;  %v223_v40 = vmul.u32 %v219_v32, %v196_v26  ;;  %v224_v45 = vmul.u32 %v220_v33, %v196_v26 }
  0x52   : > { %v199_v35 = vmul.u32 %v197_v30, %v195_v25  ;;  %v200_v36 = vmul.u32 %v198_v31, %v195_v25  ;;  %v201_v37 = vmul.u32 %v197_v30, %v196_v26  ;;  %v202_v41 = vmul.u32 %v198_v31, %v196_v26 }
  0x53   : > { %v225_v46 = vshll.u32 %v222_v39, 16  ;;  %v227_v48 = vshll.u32 %v223_v40, 16  ;;  %v226_v60 = vshrl.u32 %v222_v39, 16  ;;  %v228_v2 = vshrl.u32 %v223_v40, 16  ;;  %v306_v40 = vld [vmem:[#allocation2 + $0x28] sm:$0xff] }
  0x54   : > { %v203_v42 = vshll.u32 %v200_v36, 16  ;;  %v205_v43 = vshll.u32 %v201_v37, 16  ;;  %v204_v56 = vshrl.u32 %v200_v36, 16  ;;  %v206_v63 = vshrl.u32 %v201_v37, 16  ;;  %v308_v36 = vld [vmem:[#allocation2 + $0x38] sm:$0xff] }
  0x55   : > { %vm229_vm12 = vc.u32 %v221_v38, %v225_v46  ;;  %v231_v55 = vadd.s32 %v225_v46, %v221_v38  ;;  %v1096_v37 = vand.u32 4294901760, %v308_v36  ;;  %v304_v46 = vld [vmem:[#allocation2 + $0x18] sm:$0xff] }
  0x56   : > { %vm207_vm11 = vc.u32 %v199_v35, %v203_v42  ;;  %v209_v50 = vadd.s32 %v203_v42, %v199_v35  ;;  %v230_v58 = vsel %vm229_vm12, 1, %v949_v52 }
  0x57   : > { %v208_v53 = vsel %vm207_vm11, 1, %v949_v52  ;;  %v232_v61 = vadd.s32 %v230_v58, %v224_v45  ;;  %vm233_vm14 = vc.u32 %v231_v55, %v227_v48  ;;  %v235_v5 = vadd.s32 %v231_v55, %v227_v48  ;;  %511 = vmatpush.msrb.mxu2 %v1096_v37 }
  0x58   : > { %v210_v57 = vadd.s32 %v208_v53, %v202_v41  ;;  %vm211_vm13 = vc.u32 %v209_v50, %v205_v43  ;;  %v234_v1 = vsel %vm233_vm14, 1, %v949_v52  ;;  %v368_v41 = vand.u32 4294901760, %v1034_v21 }
  0x59   : > { %v212_v59 = vsel %vm211_vm13, 1, %v949_v52  ;;  %v236_v3 = vadd.s32 %v234_v1, %v232_v61  ;;  %v1101_v42 = vsub.f32 %v308_v36, %v1096_v37  ;;  %v1103_v43 = vand.u32 4294901760, %v306_v40 }
  0x5a   : > { %v214_v0 = vadd.s32 %v212_v59, %v210_v57  ;;  %v369_v48 = vsub.f32 %v1034_v21, %v368_v41  ;;  %463 = vmatpush.msrb.mxu0 %v368_v41  ;;  %v1113_v55 = vand.u32 4294901760, %v304_v46  ;;  %v375_v21 = vsub.f32 %v1042_v29, %v374_v49 }
  0x5b   : > { %v237_v7 = vadd.s32 %v236_v3, %v226_v60  ;;  %v541_v50 = vand.u32 4294901760, %v1101_v42  ;;  %513 = vmatpush.msrb.mxu2 %v1103_v43  ;;  %v1110_v51 = vsub.f32 %v306_v40, %v1103_v43 }
  0x5c   : > { %v215_v4 = vadd.s32 %v214_v0, %v204_v56  ;;  %v302_v56 = vld [vmem:[#allocation2 + $0x8] sm:$0xff]  ;;  %v370_v57 = vand.u32 4294901760, %v369_v48  ;;  %467 = vmatpush.msrb.mxu0 %v374_v49  ;;  %v1128_v62 = vsub.f32 %v304_v46, %v1113_v55 }
  0x5d   : > { %v238_v14 = vadd.s32 %v237_v7, %v228_v2  ;;  %v542_v58 = vsub.f32 %v1101_v42, %v541_v50  ;;  %v547_v59 = vand.u32 4294901760, %v1110_v51  ;;  %515 = vmatpush.msrb.mxu2 %v1113_v55  ;;  %v1130_v29 = vand.u32 4294901760, %v302_v56 }
  0x5e   : > { %v216_v12 = vadd.s32 %v215_v4, %v206_v63  ;;  %371 = vmatpush.msra.mxu1 %v370_v57  ;;  %v376_v63 = vand.u32 4294901760, %v375_v21  ;;  %v553_v3 = vand.u32 4294901760, %v1128_v62 }
  0x5f   : > { %v242_v16 = vadd.s32 1, %v238_v14  ;;  %v543_v0 = vand.u32 4294901760, %v542_v58  ;;  %v548_v1 = vsub.f32 %v1110_v51, %v547_v59  ;;  %517 = vmatpush.msrb.mxu2 %v1130_v29  ;;  %v1142_v4 = vsub.f32 %v302_v56, %v1130_v29 }
  0x60   : > { %vm241_vm15 = vc.u32 %v216_v12, %v235_v5  ;;  %v240_v54 = vadd.s32 %v235_v5, %v216_v12  ;;  %377 = vmatpush.msra.mxu1 %v376_v63  ;;  %v554_v12 = vsub.f32 %v1128_v62, %v553_v3 }
  0x61   : > { %v243_v17 = vsel %vm241_vm15, %v242_v16, %v238_v14  ;;  %544 = vmatpush.msrb.mxu3 %v543_v0  ;;  %v549_v6 = vand.u32 4294901760, %v548_v1  ;;  %v559_v14 = vand.u32 4294901760, %v1142_v4 }
  0x62   : > { %v244_v18 = vadd.s32 %v243_v17, %v239_v15  ;;  %486 = vmatpush.msrb.mxu1 %v1019_v8 }
  0x63   : > { %550 = vmatpush.msrb.mxu3 %v549_v6 }
  0x64   : > { %v245_v13 = vadd.s32 536870912, %v244_v18  ;;  %488 = vmatpush.msrb.mxu1 %v1021_v9 }
  0x66   : > { %v246_v19 = vshrl.u32 %v245_v13, 30  ;;  %v560_v13 = vsub.f32 %v1142_v4, %v559_v14  ;;  %490 = vmatpush.msrb.mxu1 %v1024_v11 }
  0x68   : > { %v247_v22 = vshll.u32 %v246_v19, 30  ;;  %v270_v53 = vsub.s32 4, %v246_v19  ;;  %492 = vmatpush.msrb.mxu1 %v1031_v20 }
  0x6a   : > { %v248_v23 = vsub.s32 %v244_v18, %v247_v22  ;;  %v271_v2 = vsel %vm148_vm2, %v270_v53, %v246_v19  ;;  %v555_v18 = vand.u32 4294901760, %v554_v12 }
  0x6b   : > { %v273_v15 = vsel %vm1122_vm3, 0, %v271_v2 }
  0x6c   : > { %vm249_vm0 = vcmp.lt.s32.totalorder %v248_v23, 0  ;;  %v250_v24 = vsub.s32 0, %v248_v23  ;;  %556 = vmatpush.msrb.mxu3 %v555_v18  ;;  %v290_v8 = vadd.s32 3, %v273_v15 }
  0x6e   : > { %v251_v25 = vsel %vm249_vm0, %v250_v24, %v248_v23 }
  0x6f   : > { %v252_v26 = vclz %v251_v25 }
  0x71   : > { %v771_v27 = vadd.s32 4294967294, %v252_v26 }
  0x73   : > { %vm772_vm1 = vcmp.lt.s32.totalorder %v771_v27, 0 }
  0x74   : > { %v255_v28 = vsel %vm772_vm1, 0, %v771_v27 }
  0x75   : > { %v256_v30 = vsub.s32 32, %v255_v28  ;;  %v257_v31 = vshll.u32 %v248_v23, %v255_v28  ;;  %v260_v32 = vsub.s32 4294967266, %v255_v28  ;;  %v561_v23 = vand.u32 4294901760, %v560_v13 }
  0x77   : > { %v258_v10 = vshrl.u32 %v240_v54, %v256_v30  ;;  %v261_v33 = vadd.s32 127, %v260_v32  ;;  %562 = vmatpush.msrb.mxu3 %v561_v23  ;;  %v291_v54 = vand.u32 3, %v290_v8 }
  0x79   : > { %v259_v34 = vor.u32 %v258_v10, %v257_v31  ;;  %v262_v35 = vshll.u32 %v261_v33, 23  ;;  %vm296_vm4 = vcmp.eq.s32.totalorder %v291_v54, 2  ;;  %vm293_vm5 = vcmp.eq.s32.totalorder %v291_v54, 0 }
  0x7a   : > { %vm292_vm6 = vcmp.lt.s32.totalorder %v291_v54, 2 }
  0x7b   : > { %v263_v38 = vor.u32 4788187, %v262_v35  ;;  %v266_v39 = vcvt.s32.f32 %v259_v34 }
  0x7d   : > { %v264_v45 = vand.u32 2147483647, %v263_v38 }
  0x7f   : > { %v267_v52 = vmul.f32 %v266_v39, %v264_v45 }
  0x81   : > { %v268_v61 = vxor.u32 2147483648, %v267_v52 }
  0x83   : > { %v269_v47 = vsel %vm148_vm2, %v268_v61, %v267_v52 }
  0x84   : > { %v272_v5 = vsel %vm1122_vm3, %v1055_v44, %v269_v47 }
  0x85   : > { %v274_v7 = vmul.f32 %v272_v5, %v272_v5 }
  0x87   : > { %v275_v16 = vmul.f32 -0.001358992, %v274_v7  ;;  %v282_v17 = vmul.f32 -0.00019511016, %v274_v7 }
  0x89   : > { %v276_v19 = vadd.f32 0.041655596, %v275_v16  ;;  %v283_v22 = vadd.f32 0.008332121, %v282_v17 }
  0x8b   : > { %v277_v24 = vmul.f32 %v276_v19, %v274_v7  ;;  %v284_v25 = vmul.f32 %v283_v22, %v274_v7 }
  0x8d   : > { %v278_v26 = vadd.f32 -0.4999988, %v277_v24  ;;  %v285_v27 = vadd.f32 -0.16666654, %v284_v25 }
  0x8f   : > { %v279_v28 = vmul.f32 %v278_v26, %v274_v7  ;;  %v286_v30 = vmul.f32 %v285_v27, %v274_v7 }
  0x91   : > { %v280_v9 = vadd.f32 1.0, %v279_v28  ;;  %v287_v31 = vadd.f32 1.0, %v286_v30 }
  0x93   : > { %v288_v32 = vmul.f32 %v287_v31, %v272_v5  ;;  %v297_v10 = vxor.u32 2147483648, %v280_v9 }
  0x95   : > { %v294_v33 = vxor.u32 2147483648, %v288_v32  ;;  %v298_v11 = vsel %vm296_vm4, %v297_v10, %v288_v32 }
  0x97   : > { %v295_v34 = vsel %vm293_vm5, %v280_v9, %v294_v33 }
  0x98   : > { %v299_v35 = vsel %vm292_vm6, %v295_v34, %v298_v11 }
  0x99   : > { %v300_v20 = vsel %vm289_vm7, nan, %v299_v35 }
  0x9a   : > { %v311_v36 = vsel %vm309_vm8, %v300_v20, 0 }
  0x9b   : > { %v333_v38 = vand.u32 4294901760, %v311_v36 }
  0x9d   : > { %v334_v39 = vsub.f32 %v311_v36, %v333_v38  ;;  %379 = vmatmul.f32.vlgmr.msra.gmra.mxu1 %v333_v38 }
  0x9e   : > { %611 = vmatpush.msra.mxu1 %v1096_v37 }
  0x9f   : > { %409 = vmatmul.f32.vlgmr.msra.gmra.mxu2 %v334_v39  ;;  %v335_v40 = vand.u32 4294901760, %v334_v39 }
  0xa0   : > { %640 = vmatpush.msra.mxu2 %v541_v50  ;;  %613 = vmatpush.msra.mxu1 %v1103_v43 }
  0xa1   : > { %436 = vmatmul.f32.vlgmr.msra.gmra.mxu3 %v335_v40  ;;  %v336_v41 = vsub.f32 %v334_v39, %v335_v40 }
  0xa2   : > { %644 = vmatpush.msra.mxu2 %v547_v59  ;;  %671 = vmatpush.msra.mxu3 %v1096_v37 }
  0xa3   : > { %v337_v44 = vand.u32 4294901760, %v336_v41  ;;  %615 = vmatpush.msra.mxu1 %v1113_v55 }
  0xa4   : > { %648 = vmatpush.msra.mxu2 %v553_v3  ;;  %673 = vmatpush.msra.mxu3 %v1103_v43 }
  0xa5   : > { %338 = vmatmul.f32.vlgmr.msra.gmra.mxu0 %v337_v44  ;;  %494 = vmatmul.f32.vlgmr.msrb.gmra.mxu1 %v333_v38 }
  0xa6   : > { %582 = vmatpush.msra.mxu0 %v1101_v42  ;;  %652 = vmatpush.msra.mxu2 %v559_v14 }
  0xa7   : > { %523 = vmatmul.f32.vlgmr.msrb.gmra.mxu2 %v337_v44  ;;  %675 = vmatpush.msra.mxu3 %v1113_v55 }
  0xa8   : > { %585 = vmatpush.msra.mxu0 %v1110_v51  ;;  %617 = vmatpush.msra.mxu1 %v1130_v29 }
  0xa9   : > { %564 = vmatmul.f32.vlgmr.msrb.gmra.mxu3 %v333_v38 }
  0xaa   : > { %588 = vmatpush.msra.mxu0 %v1128_v62  ;;  %677 = vmatpush.msra.mxu3 %v1130_v29 }
  0xac   : > { %591 = vmatpush.msra.mxu0 %v1142_v4 }
  0xad   : > { %469 = vmatmul.f32.vlgmr.msrb.gmra.mxu0 %v333_v38  ;;  %621 = vmatmul.f32.vlgmr.msra.gmra.mxu1 %v335_v40 }
  0xaf   : > { %654 = vmatmul.f32.vlgmr.msra.gmra.mxu2 %v333_v38 }
  0xb1   : > { %679 = vmatmul.f32.vlgmr.msra.gmra.mxu3 %v333_v38 }
  0xb5   : > { %594 = vmatmul.f32.vlgmr.msra.gmra.mxu0 %v334_v39 }
 0x11a   : > { %v380_v37 = vpop.f32.mrf.mxu1 }
 0x122   : > { %v339_v42 = vpop.f32.mrf.mxu0  ;;  %v410_v43 = vpop.f32.mrf.mxu2 }
 0x123   : > { %v381_v45 = vadd.f32 %v380_v37, %v339_v42  ;;  %v495_v49 = vpop.f32.mrf.mxu1 }
 0x124   : > { %v437_v46 = vpop.f32.mrf.mxu3 }
 0x125   : > { %v411_v48 = vadd.f32 %v410_v43, %v381_v45 }
 0x127   : > { %v438_v50 = vadd.f32 %v437_v46, %v411_v48 }
 0x12a   : > { %v470_v51 = vpop.f32.mrf.mxu0  ;;  %v524_v52 = vpop.f32.mrf.mxu2 }
 0x12b   : > { %v471_v53 = vadd.f32 %v470_v51, %v438_v50  ;;  %v622_v58 = vpop.f32.mrf.mxu1 }
 0x12c   : > { %v565_v56 = vpop.f32.mrf.mxu3 }
 0x12d   : > { %v496_v55 = vadd.f32 %v495_v49, %v471_v53  ;;  %v566_v57 = vadd.f32 %v565_v56, %v524_v52 }
 0x12f   : > { %683 = vst [vmem:[%s111_s28] sm:$0xff] %v496_v55 }
 0x132   : > { %v595_v21 = vpop.f32.mrf.mxu0  ;;  %v655_v60 = vpop.f32.mrf.mxu2 }
 0x133   : > { %v596_v59 = vadd.f32 %v595_v21, %v566_v57 }
 0x134   : > { %v680_v62 = vpop.f32.mrf.mxu3 }
 0x135   : > { %v623_v61 = vadd.f32 %v622_v58, %v596_v59 }
 0x137   : > { %v656_v29 = vadd.f32 %v655_v60, %v623_v61 }
 0x139   : > { %v681_v63 = vadd.f32 %v680_v62, %v656_v29 }
 0x13b   : > { %684 = vst [vmem:[%s111_s28 + $0x8] sm:$0xff] %v681_v63 }
 0x13c   : > { %898 = shalt.err (!%p895_p7)
}
 0x13d   : > { %783 = dma.vmem_to_hbm [thread:$0]  (%p998_p5), %s700_s4, 256, %s702_s5, %s686_s10  }
 0x13e PF: > { %p795_p8 = scmp.ge.s32.totalorder %s937_s9, 2  ;;  %s713_s22 = sand.u32 1, %s925_s6  }
 0x13f   : > { %s714_s23 = scalar_lea.sflag [#allocation4], %s713_s22 }
 0x140   : > { %p790_p9 = pnand %p795_p8, %p1002_p6 }
 0x142   : > { %p791_p10 = pneg %p790_p9 }
 0x144   : > { %920 = dma.done.wait (%p791_p10), %s714_s23, 256  }
 0x145   : > { %922 = vsyncadd (%p791_p10), %s714_s23, 4294967040  ;;  %p12_p11 = scmp.ge.s32.totalorder %s985_s12, 6   ;;  %s1213_s6 = smov %s929_s7 }
 0x146   : > { %s1214_s7 = smov %s933_s8  ;;  %s1215_s8 = smov %s996_s15 }
 0x147   : > { %s1216_s9 = smov %s985_s12  ;;  %14 = sbr.rel (!%p12_p11) target bundleno = 4 (0x4), region = 61 }
 0x14c   :  { %720 = vsyncpa [#allocation3], 1 }
 0x14d   :  { %722 = vsyncpa [#allocation3 + $0x1], 1 }
 0x14e   :  { %723 = vsyncpa [#allocation4], 1 }
 0x14f   :  { %725 = vsyncpa [#allocation4 + $0x1], 1 }

</bundles_post_ra>
